<compile_context>
chip_gen: v7x
topology: tpu7x:2x2x1
jax: 0.10.0
libtpu: 0.0.40
codegen_flags: <defaults>
</compile_context>

<pallas_src>
import functools

import jax
import jax.numpy as jnp
from jax.experimental import pallas as pl
from jax.experimental.pallas import tpu as pltpu


K_PAD = 256      # fc1 contraction dim padded 201 -> 256
LANE_PAD = 128   # output lanes padded len_op -> 128 (lane-dense store)


def _round_up(v, m):
    return ((v + m - 1) // m) * m


def _mlp_kernel(x_ref,
                w1_ref, b1_ref,
                w2_ref, b2_ref,
                w3_ref, b3_ref,
                w4_ref, b4_ref,
                w5_ref, b5_ref,
                o_ref,
                *, len_op):
    """One batch tile: 5x (bf16 matmul -> f32 bias+ReLU) then masked log_softmax."""

    def dense_relu(h_bf16, w_ref, b_ref):
        y = jnp.dot(h_bf16, w_ref[...], preferred_element_type=jnp.float32)
        y = y + b_ref[...]                 # (1, out) broadcasts over batch rows
        return jnp.maximum(y, 0.0)         # f32

    x = x_ref[...]                                          # (TB, 256) bf16
    h = dense_relu(x, w1_ref, b1_ref)                       # (TB, 256) f32
    h = dense_relu(h.astype(jnp.bfloat16), w2_ref, b2_ref)  # (TB, 256)
    h = dense_relu(h.astype(jnp.bfloat16), w3_ref, b3_ref)  # (TB, 128)
    # dropout(p=0.5) -> identity in eval mode
    h = dense_relu(h.astype(jnp.bfloat16), w4_ref, b4_ref)  # (TB, 64)
    h = dense_relu(h.astype(jnp.bfloat16), w5_ref, b5_ref)  # (TB, 128), ReLU on
    #                                                         logits per the spec

    # Mask padded output lanes to -inf, then log_softmax over the lane axis.
    col = jax.lax.broadcasted_iota(jnp.int32, h.shape, 1)
    hm = jnp.where(col < len_op, h, jnp.full_like(h, -jnp.inf))
    m = jnp.max(hm, axis=-1, keepdims=True)
    s = hm - m
    lse = jnp.log(jnp.sum(jnp.exp(s), axis=-1, keepdims=True))
    o_ref[...] = s - lse


def init_params(key, len_op=10):
    """Synthetic init matching nn.Linear shapes, stored transposed as (in, out)."""
    dims = [(201, 256), (256, 256), (256, 128), (128, 64), (64, len_op)]
    params = {}
    for i, (fan_in, fan_out) in enumerate(dims, start=1):
        key, kw, kb = jax.random.split(key, 3)
        bound = 1.0 / jnp.sqrt(fan_in)
        params[f"w{i}"] = jax.random.uniform(
            kw, (fan_in, fan_out), jnp.float32, minval=-bound, maxval=bound)
        params[f"b{i}"] = jax.random.uniform(
            kb, (1, fan_out), jnp.float32, minval=-bound, maxval=bound)
    return params


def prepare_params(params):
    """One-time host-side prep: pad fc1 K-dim and fc5 lanes, cast weights to bf16."""
    len_op = params["w5"].shape[1]
    w1 = jnp.zeros((K_PAD, 256), jnp.float32).at[:201, :].set(
        params["w1"]).astype(jnp.bfloat16)
    w5 = jnp.zeros((64, LANE_PAD), jnp.float32).at[:, :len_op].set(
        params["w5"]).astype(jnp.bfloat16)
    b5 = jnp.zeros((1, LANE_PAD), jnp.float32).at[:, :len_op].set(params["b5"])
    return {
        "len_op": len_op,
        "w1": w1, "b1": params["b1"],
        "w2": params["w2"].astype(jnp.bfloat16), "b2": params["b2"],
        "w3": params["w3"].astype(jnp.bfloat16), "b3": params["b3"],
        "w4": params["w4"].astype(jnp.bfloat16), "b4": params["b4"],
        "w5": w5, "b5": b5,
    }


def ann_hist1_forward(x, prepped):
    """x: (B, 201) float32. prepped: output of prepare_params()."""
    B, f_in = x.shape
    len_op = prepped["len_op"]

    # Batch tile: MXU-sized (up to 256 rows), padded to a whole number of tiles.
    TB = min(256, _round_up(max(B, 1), 8))
    B_pad = _round_up(B, TB)
    grid = (B_pad // TB,)

    # Host-side: pad batch + features, cast activations to bf16 (halves x DMA).
    x_p = jnp.zeros((B_pad, K_PAD), jnp.float32).at[:B, :f_in].set(x)
    x_p = x_p.astype(jnp.bfloat16)

    args = (
        x_p,
        prepped["w1"], prepped["b1"],
        prepped["w2"], prepped["b2"],
        prepped["w3"], prepped["b3"],
        prepped["w4"], prepped["b4"],
        prepped["w5"], prepped["b5"],
    )

    def resident(shape):
        # Same block index every grid step -> stays VMEM-resident (no re-DMA).
        return pl.BlockSpec(shape, lambda i: (0, 0))

    in_specs = [
        pl.BlockSpec((TB, K_PAD), lambda i: (i, 0)),     # x: pipelined over batch
        resident((K_PAD, 256)), resident((1, 256)),      # w1, b1
        resident((256, 256)),   resident((1, 256)),      # w2, b2
        resident((256, 128)),   resident((1, 128)),      # w3, b3
        resident((128, 64)),    resident((1, 64)),       # w4, b4
        resident((64, LANE_PAD)), resident((1, LANE_PAD)),  # w5, b5
    ]
    out_specs = pl.BlockSpec((TB, LANE_PAD), lambda i: (i, 0))

    flops = 2 * B_pad * (K_PAD * 256 + 256 * 256 + 256 * 128 + 128 * 64
                         + 64 * LANE_PAD)
    transcendentals = B_pad * (LANE_PAD + 1)  # exp per lane + log per row
    bytes_accessed = (sum(a.size * a.dtype.itemsize for a in args)
                      + B_pad * LANE_PAD * 4)

    out_padded = pl.pallas_call(
        functools.partial(_mlp_kernel, len_op=len_op),
        out_shape=jax.ShapeDtypeStruct((B_pad, LANE_PAD), jnp.float32),
        grid=grid,
        in_specs=in_specs,
        out_specs=out_specs,
        compiler_params=pltpu.CompilerParams(
            dimension_semantics=("parallel",)),
        cost_estimate=pl.CostEstimate(
            flops=flops,
            transcendentals=transcendentals,
            bytes_accessed=bytes_accessed),
    )(*args)

    return out_padded[:B, :len_op]


def reference_forward_f32(x, params):
    """Pure-JAX f32 reference matching the PyTorch module semantics."""
    h = x
    for i in range(1, 6):
        h = jnp.maximum(h @ params[f"w{i}"] + params[f"b{i}"], 0.0)
    return jax.nn.log_softmax(h, axis=1)


def reference_forward_bf16(x, prepped):
    """Pure-JAX reference with the same bf16 operand casts as the kernel."""
    len_op = prepped["len_op"]
    h = jnp.zeros((x.shape[0], K_PAD), jnp.float32).at[:, :x.shape[1]].set(x)
    h = h.astype(jnp.bfloat16)
    y = None
    for i in range(1, 6):
        y = jnp.dot(h, prepped[f"w{i}"], preferred_element_type=jnp.float32)
        y = jnp.maximum(y + prepped[f"b{i}"], 0.0)
        h = y.astype(jnp.bfloat16)
    return jax.nn.log_softmax(y[:, :len_op], axis=1)


if __name__ == "__main__":
    key = jax.random.PRNGKey(0)
    k_param, k_x = jax.random.split(key)

    params = init_params(k_param, len_op=10)
    prepped = prepare_params(params)

    # Input: batch=64 (the module's batch attr), 201 features (post-Flatten).
    x = jax.random.normal(k_x, (64, 201), dtype=jnp.float32)

    out = ann_hist1_forward(x, prepped)
    out = jax.block_until_ready(out)
    assert out.shape == (64, 10)

    # Tight check vs a reference using the same bf16 matmul operands.
    ref_bf16 = reference_forward_bf16(x, prepped)
    assert jnp.allclose(out, ref_bf16, atol=5e-3, rtol=5e-3), "mismatch vs bf16 ref"

    # Loose check vs the full-f32 reference (bounds bf16 quantization error).
    ref_f32 = reference_forward_f32(x, params)
    assert jnp.allclose(out, ref_f32, atol=1e-1, rtol=1e-1), "mismatch vs f32 ref"

    # Rows must be valid log-probabilities (padded lanes masked correctly).
    assert jnp.allclose(jnp.exp(out).sum(axis=1), 1.0, atol=1e-4)

    print("KERNEL_OK")
</pallas_src>

<mosaic_0001>
module attributes {stable_mosaic.version = 11 : i64} {
  func.func @_mlp_kernel(%arg0: i32, %arg1: memref<64x256xbf16, #tpu.memory_space<vmem>>, %arg2: memref<256x256xbf16, #tpu.memory_space<vmem>>, %arg3: memref<1x256xf32, #tpu.memory_space<vmem>>, %arg4: memref<256x256xbf16, #tpu.memory_space<vmem>>, %arg5: memref<1x256xf32, #tpu.memory_space<vmem>>, %arg6: memref<256x128xbf16, #tpu.memory_space<vmem>>, %arg7: memref<1x128xf32, #tpu.memory_space<vmem>>, %arg8: memref<128x64xbf16, #tpu.memory_space<vmem>>, %arg9: memref<1x64xf32, #tpu.memory_space<vmem>>, %arg10: memref<64x128xbf16, #tpu.memory_space<vmem>>, %arg11: memref<1x128xf32, #tpu.memory_space<vmem>>, %arg12: memref<64x128xf32, #tpu.memory_space<vmem>>) attributes {dimension_semantics = [#tpu.dimension_semantics<parallel>], iteration_bounds = array<i64: 1>, scalar_prefetch = 0 : i64, scratch_operands = 0 : i64, tpu.core_type = #tpu.core_type<tc>, window_params = [{transform_indices = @transform_0, window_bounds = array<i64: 64, 256>}, {pipeline_mode = #tpu.pipeline_mode<synchronous>, transform_indices = @transform_1, window_bounds = array<i64: 256, 256>}, {pipeline_mode = #tpu.pipeline_mode<synchronous>, transform_indices = @transform_2, window_bounds = array<i64: 1, 256>}, {pipeline_mode = #tpu.pipeline_mode<synchronous>, transform_indices = @transform_3, window_bounds = array<i64: 256, 256>}, {pipeline_mode = #tpu.pipeline_mode<synchronous>, transform_indices = @transform_4, window_bounds = array<i64: 1, 256>}, {pipeline_mode = #tpu.pipeline_mode<synchronous>, transform_indices = @transform_5, window_bounds = array<i64: 256, 128>}, {pipeline_mode = #tpu.pipeline_mode<synchronous>, transform_indices = @transform_6, window_bounds = array<i64: 1, 128>}, {pipeline_mode = #tpu.pipeline_mode<synchronous>, transform_indices = @transform_7, window_bounds = array<i64: 128, 64>}, {pipeline_mode = #tpu.pipeline_mode<synchronous>, transform_indices = @transform_8, window_bounds = array<i64: 1, 64>}, {pipeline_mode = #tpu.pipeline_mode<synchronous>, transform_indices = @transform_9, window_bounds = array<i64: 64, 128>}, {pipeline_mode = #tpu.pipeline_mode<synchronous>, transform_indices = @transform_10, window_bounds = array<i64: 1, 128>}, {transform_indices = @transform_11, window_bounds = array<i64: 64, 128>}]} {
    %c0 = arith.constant 0 : index
    %c0_0 = arith.constant 0 : index
    %0 = vector.load %arg1[%c0, %c0_0] : memref<64x256xbf16, #tpu.memory_space<vmem>>, vector<64x256xbf16>
    %c0_1 = arith.constant 0 : index
    %c0_2 = arith.constant 0 : index
    %1 = vector.load %arg2[%c0_1, %c0_2] : memref<256x256xbf16, #tpu.memory_space<vmem>>, vector<256x256xbf16>
    %cst = arith.constant dense<0.000000e+00> : vector<64x256xf32>
    %2 = tpu.matmul %0, %1, %cst {dimension_numbers = #tpu.dot_dimension_numbers<[1], [0], [0], [1], [0, 0, 1, 1], [], []>} : vector<64x256xbf16>, vector<256x256xbf16>, vector<64x256xf32> -> vector<64x256xf32>
    %c0_3 = arith.constant 0 : index
    %c0_4 = arith.constant 0 : index
    %3 = vector.load %arg3[%c0_3, %c0_4] : memref<1x256xf32, #tpu.memory_space<vmem>>, vector<1x256xf32>
    %4 = vector.broadcast %3 : vector<1x256xf32> to vector<64x256xf32>
    %5 = arith.addf %2, %4 : vector<64x256xf32>
    %cst_5 = arith.constant 0.000000e+00 : f32
    %6 = vector.broadcast %cst_5 : f32 to vector<64x256xf32>
    %7 = arith.maximumf %5, %6 : vector<64x256xf32>
    %8 = arith.truncf %7 : vector<64x256xf32> to vector<64x256xbf16>
    %c0_6 = arith.constant 0 : index
    %c0_7 = arith.constant 0 : index
    %9 = vector.load %arg4[%c0_6, %c0_7] : memref<256x256xbf16, #tpu.memory_space<vmem>>, vector<256x256xbf16>
    %cst_8 = arith.constant dense<0.000000e+00> : vector<64x256xf32>
    %10 = tpu.matmul %8, %9, %cst_8 {dimension_numbers = #tpu.dot_dimension_numbers<[1], [0], [0], [1], [0, 0, 1, 1], [], []>} : vector<64x256xbf16>, vector<256x256xbf16>, vector<64x256xf32> -> vector<64x256xf32>
    %c0_9 = arith.constant 0 : index
    %c0_10 = arith.constant 0 : index
    %11 = vector.load %arg5[%c0_9, %c0_10] : memref<1x256xf32, #tpu.memory_space<vmem>>, vector<1x256xf32>
    %12 = vector.broadcast %11 : vector<1x256xf32> to vector<64x256xf32>
    %13 = arith.addf %10, %12 : vector<64x256xf32>
    %cst_11 = arith.constant 0.000000e+00 : f32
    %14 = vector.broadcast %cst_11 : f32 to vector<64x256xf32>
    %15 = arith.maximumf %13, %14 : vector<64x256xf32>
    %16 = arith.truncf %15 : vector<64x256xf32> to vector<64x256xbf16>
    %c0_12 = arith.constant 0 : index
    %c0_13 = arith.constant 0 : index
    %17 = vector.load %arg6[%c0_12, %c0_13] : memref<256x128xbf16, #tpu.memory_space<vmem>>, vector<256x128xbf16>
    %cst_14 = arith.constant dense<0.000000e+00> : vector<64x128xf32>
    %18 = tpu.matmul %16, %17, %cst_14 {dimension_numbers = #tpu.dot_dimension_numbers<[1], [0], [0], [1], [0, 0, 1, 1], [], []>} : vector<64x256xbf16>, vector<256x128xbf16>, vector<64x128xf32> -> vector<64x128xf32>
    %c0_15 = arith.constant 0 : index
    %c0_16 = arith.constant 0 : index
    %19 = vector.load %arg7[%c0_15, %c0_16] : memref<1x128xf32, #tpu.memory_space<vmem>>, vector<1x128xf32>
    %20 = vector.broadcast %19 : vector<1x128xf32> to vector<64x128xf32>
    %21 = arith.addf %18, %20 : vector<64x128xf32>
    %cst_17 = arith.constant 0.000000e+00 : f32
    %22 = vector.broadcast %cst_17 : f32 to vector<64x128xf32>
    %23 = arith.maximumf %21, %22 : vector<64x128xf32>
    %24 = arith.truncf %23 : vector<64x128xf32> to vector<64x128xbf16>
    %c0_18 = arith.constant 0 : index
    %c0_19 = arith.constant 0 : index
    %25 = vector.load %arg8[%c0_18, %c0_19] : memref<128x64xbf16, #tpu.memory_space<vmem>>, vector<128x64xbf16>
    %cst_20 = arith.constant dense<0.000000e+00> : vector<64x64xf32>
    %26 = tpu.matmul %24, %25, %cst_20 {dimension_numbers = #tpu.dot_dimension_numbers<[1], [0], [0], [1], [0, 0, 1, 1], [], []>} : vector<64x128xbf16>, vector<128x64xbf16>, vector<64x64xf32> -> vector<64x64xf32>
    %c0_21 = arith.constant 0 : index
    %c0_22 = arith.constant 0 : index
    %27 = vector.load %arg9[%c0_21, %c0_22] : memref<1x64xf32, #tpu.memory_space<vmem>>, vector<1x64xf32>
    %28 = vector.broadcast %27 : vector<1x64xf32> to vector<64x64xf32>
    %29 = arith.addf %26, %28 : vector<64x64xf32>
    %cst_23 = arith.constant 0.000000e+00 : f32
    %30 = vector.broadcast %cst_23 : f32 to vector<64x64xf32>
    %31 = arith.maximumf %29, %30 : vector<64x64xf32>
    %32 = arith.truncf %31 : vector<64x64xf32> to vector<64x64xbf16>
    %c0_24 = arith.constant 0 : index
    %c0_25 = arith.constant 0 : index
    %33 = vector.load %arg10[%c0_24, %c0_25] : memref<64x128xbf16, #tpu.memory_space<vmem>>, vector<64x128xbf16>
    %cst_26 = arith.constant dense<0.000000e+00> : vector<64x128xf32>
    %34 = tpu.matmul %32, %33, %cst_26 {dimension_numbers = #tpu.dot_dimension_numbers<[1], [0], [0], [1], [0, 0, 1, 1], [], []>} : vector<64x64xbf16>, vector<64x128xbf16>, vector<64x128xf32> -> vector<64x128xf32>
    %c0_27 = arith.constant 0 : index
    %c0_28 = arith.constant 0 : index
    %35 = vector.load %arg11[%c0_27, %c0_28] : memref<1x128xf32, #tpu.memory_space<vmem>>, vector<1x128xf32>
    %36 = vector.broadcast %35 : vector<1x128xf32> to vector<64x128xf32>
    %37 = arith.addf %34, %36 : vector<64x128xf32>
    %cst_29 = arith.constant 0.000000e+00 : f32
    %38 = vector.broadcast %cst_29 : f32 to vector<64x128xf32>
    %39 = arith.maximumf %37, %38 : vector<64x128xf32>
    %40 = tpu.iota {dimensions = array<i32: 1>} : vector<64x128xi32>
    %c10_i32 = arith.constant 10 : i32
    %41 = vector.broadcast %c10_i32 : i32 to vector<64x128xi32>
    %42 = arith.cmpi slt, %40, %41 : vector<64x128xi32>
    %cst_30 = arith.constant 0xFF800000 : f32
    %43 = vector.broadcast %cst_30 : f32 to vector<64x128xf32>
    %44 = arith.select %42, %39, %43 : vector<64x128xi1>, vector<64x128xf32>
    %cst_31 = arith.constant dense<0xFF800000> : vector<64xf32>
    %45 = vector.multi_reduction <maximumf>, %44, %cst_31 [1] : vector<64x128xf32> to vector<64xf32>
    %46 = vector.shape_cast %45 : vector<64xf32> to vector<64x1xf32>
    %47 = vector.broadcast %46 : vector<64x1xf32> to vector<64x128xf32>
    %48 = arith.subf %44, %47 : vector<64x128xf32>
    %49 = math.exp %48 : vector<64x128xf32>
    %cst_32 = arith.constant dense<0.000000e+00> : vector<64xf32>
    %50 = vector.multi_reduction <add>, %49, %cst_32 [1] : vector<64x128xf32> to vector<64xf32>
    %51 = vector.shape_cast %50 : vector<64xf32> to vector<64x1xf32>
    %52 = math.log %51 : vector<64x1xf32>
    %53 = vector.broadcast %52 : vector<64x1xf32> to vector<64x128xf32>
    %54 = arith.subf %48, %53 : vector<64x128xf32>
    %c0_33 = arith.constant 0 : index
    %c0_34 = arith.constant 0 : index
    %55 = vector.load %arg12[%c0_33, %c0_34] : memref<64x128xf32, #tpu.memory_space<vmem>>, vector<64x128xf32>
    tpu.vector_store %arg12[%c0_33, %c0_34], %54 {strides = array<i32>} : memref<64x128xf32, #tpu.memory_space<vmem>>, vector<64x128xf32>,
    return
  }
  func.func @transform_0(%arg0: i32) -> (i32, i32) {
    %c0_i32 = arith.constant 0 : i32
    %c0_i32_0 = arith.constant 0 : i32
    return %arg0, %c0_i32 : i32, i32
  }
  func.func @transform_1(%arg0: i32) -> (i32, i32) {
    %c0_i32 = arith.constant 0 : i32
    %c0_i32_0 = arith.constant 0 : i32
    %c0_i32_1 = arith.constant 0 : i32
    return %c0_i32, %c0_i32_0 : i32, i32
  }
  func.func @transform_2(%arg0: i32) -> (i32, i32) {
    %c0_i32 = arith.constant 0 : i32
    %c0_i32_0 = arith.constant 0 : i32
    %c0_i32_1 = arith.constant 0 : i32
    return %c0_i32, %c0_i32_0 : i32, i32
  }
  func.func @transform_3(%arg0: i32) -> (i32, i32) {
    %c0_i32 = arith.constant 0 : i32
    %c0_i32_0 = arith.constant 0 : i32
    %c0_i32_1 = arith.constant 0 : i32
    return %c0_i32, %c0_i32_0 : i32, i32
  }
  func.func @transform_4(%arg0: i32) -> (i32, i32) {
    %c0_i32 = arith.constant 0 : i32
    %c0_i32_0 = arith.constant 0 : i32
    %c0_i32_1 = arith.constant 0 : i32
    return %c0_i32, %c0_i32_0 : i32, i32
  }
  func.func @transform_5(%arg0: i32) -> (i32, i32) {
    %c0_i32 = arith.constant 0 : i32
    %c0_i32_0 = arith.constant 0 : i32
    %c0_i32_1 = arith.constant 0 : i32
    return %c0_i32, %c0_i32_0 : i32, i32
  }
  func.func @transform_6(%arg0: i32) -> (i32, i32) {
    %c0_i32 = arith.constant 0 : i32
    %c0_i32_0 = arith.constant 0 : i32
    %c0_i32_1 = arith.constant 0 : i32
    return %c0_i32, %c0_i32_0 : i32, i32
  }
  func.func @transform_7(%arg0: i32) -> (i32, i32) {
    %c0_i32 = arith.constant 0 : i32
    %c0_i32_0 = arith.constant 0 : i32
    %c0_i32_1 = arith.constant 0 : i32
    return %c0_i32, %c0_i32_0 : i32, i32
  }
  func.func @transform_8(%arg0: i32) -> (i32, i32) {
    %c0_i32 = arith.constant 0 : i32
    %c0_i32_0 = arith.constant 0 : i32
    %c0_i32_1 = arith.constant 0 : i32
    return %c0_i32, %c0_i32_0 : i32, i32
  }
  func.func @transform_9(%arg0: i32) -> (i32, i32) {
    %c0_i32 = arith.constant 0 : i32
    %c0_i32_0 = arith.constant 0 : i32
    %c0_i32_1 = arith.constant 0 : i32
    return %c0_i32, %c0_i32_0 : i32, i32
  }
  func.func @transform_10(%arg0: i32) -> (i32, i32) {
    %c0_i32 = arith.constant 0 : i32
    %c0_i32_0 = arith.constant 0 : i32
    %c0_i32_1 = arith.constant 0 : i32
    return %c0_i32, %c0_i32_0 : i32, i32
  }
  func.func @transform_11(%arg0: i32) -> (i32, i32) {
    %c0_i32 = arith.constant 0 : i32
    %c0_i32_0 = arith.constant 0 : i32
    return %arg0, %c0_i32 : i32, i32
  }
}

</mosaic_0001>

<bundles_post_ra>
// kernel: tpu_custom_call.1
= control target key start
LH: loop header
LB: loop body
LE: loop exit
PB: predicated region body
PF: predicated region fallthrough
CT: control target
= control target key end

     0   :  { %16 = vsyncpa [#allocation3], 0  ;;  %s2067_s0 = inlined_call_operand.vmem [shape: bf16[64,256], index: 0, kind: input, shape index: {}]   ;;  %s2068_s1 = inlined_call_operand.hbm [shape: bf16[256,256], index: 1, kind: input, shape index: {}]   ;;  %s2069_s2 = inlined_call_operand.vmem [shape: f32[1,256], index: 2, kind: input, shape index: {}]   ;;  %s2070_s3 = inlined_call_operand.hbm [shape: bf16[256,256], index: 3, kind: input, shape index: {}]   ;;  %s2071_s4 = inlined_call_operand.vmem [shape: f32[1,256], index: 4, kind: input, shape index: {}]   ;;  %s2072_s5 = inlined_call_operand.hbm [shape: bf16[256,128], index: 5, kind: input, shape index: {}]   ;;  %s2073_s6 = inlined_call_operand.vmem [shape: f32[1,128], index: 6, kind: input, shape index: {}]   ;;  %s2074_s7 = inlined_call_operand.vmem [shape: bf16[128,64], index: 7, kind: input, shape index: {}]   ;;  %s2075_s8 = inlined_call_operand.vmem [shape: f32[1,64], index: 8, kind: input, shape index: {}]   ;;  %s2076_s9 = inlined_call_operand.vmem [shape: bf16[64,128], index: 9, kind: input, shape index: {}]   ;;  %s2077_s10 = inlined_call_operand.vmem [shape: f32[1,128], index: 10, kind: input, shape index: {}]   ;;  %s2078_s11 = inlined_call_operand.hbm [shape: f32[64,128], index: 11, kind: output, shape index: {}]  }
   0x1   :  { %17 = vsyncpa [#allocation6], 0 }
   0x2   :  { %18 = vsyncpa [#allocation4], 0  ;;  %s1810_s17 = smov [#allocation5]   ;;  %s1811_s19 = smov [#allocation2]  }
   0x3   :  { %s40_s18 = sshll.u32 %s1810_s17, 4  ;;  %s26_s20 = sshll.u32 %s1811_s19, 4  ;;  %s41_s18 = int_to_ptr.vmem [resolvable:$true] %s40_s18  ;;  %s1878_s20 = int_to_ptr.vmem [resolvable:$true] %s26_s20 }
   0x4   :  { %s1716_s23 = scalar_lea.hbm %s2070_s3, 4096 }
   0x5   :  { %p1717_p0 = scmp.ne.s32.totalorder %s2070_s3, %s1716_s23  ;;  %p1720_p1 = scmp.lt.u32.totalorder %s1716_s23, %s2070_s3 }
   0x7   :  { %p1722_p2 = pnand %p1720_p1, %p1717_p0 }
   0x9   :  { %1725 = shalt.err (!%p1722_p2)
}
   0xa   :  { %s1726_s28 = scalar_lea.vmem %s41_s18, 4096  ;;  %p1731_p4 = scmp.lt.s32.totalorder %s41_s18, %s41_s18 }
   0xb   :  { %p1727_p3 = scmp.ne.s32.totalorder %s41_s18, %s1726_s28  ;;  %p1732_p5 = scmp.lt.s32.totalorder %s1726_s28, %s1726_s28 }
   0xd   :  { %p1733_p6 = por %p1732_p5, %p1731_p4 }
   0xf   :  { %p1734_p7 = pnand %p1733_p6, %p1727_p3 }
  0x11   :  { %1737 = shalt.err (!%p1734_p7)
}
  0x12   :  { %s1812_s29 = smov 128   ;;  %s1813_s30 = smov 8  }
  0x13   :  { %46 = dma.hbm_to_vmem [thread:$0]  %s2070_s3, 4096, %s41_s18, [#allocation6], %s1812_s29, %s1812_s29, %s1813_s30  }
  0x14   :  { %s1738_s16 = scalar_lea.hbm %s2068_s1, 4096 }
  0x15   :  { %p1739_p8 = scmp.ne.s32.totalorder %s2068_s1, %s1738_s16  ;;  %p1742_p9 = scmp.lt.u32.totalorder %s1738_s16, %s2068_s1 }
  0x17   :  { %p1744_p10 = pnand %p1742_p9, %p1739_p8 }
  0x19   :  { %1747 = shalt.err (!%p1744_p10)
}
  0x1a   :  { %s1748_s23 = scalar_lea.vmem %s1878_s20, 4096  ;;  %p1753_p12 = scmp.lt.s32.totalorder %s1878_s20, %s1878_s20 }
  0x1b   :  { %p1749_p11 = scmp.ne.s32.totalorder %s1878_s20, %s1748_s23  ;;  %p1754_p13 = scmp.lt.s32.totalorder %s1748_s23, %s1748_s23 }
  0x1d   :  { %p1755_p0 = por %p1754_p13, %p1753_p12 }
  0x1f   :  { %p1756_p1 = pnand %p1755_p0, %p1749_p11 }
  0x21   :  { %1759 = shalt.err (!%p1756_p1)
}
  0x22   :  { %32 = dma.hbm_to_vmem [thread:$0]  %s2068_s1, 4096, %s1878_s20, [#allocation3], %s1812_s29, %s1812_s29, %s1813_s30  }
  0x23   :  { %s1814_s24 = smov [#allocation7]   ;;  %s1760_s28 = scalar_lea.hbm %s2072_s5, 2048 }
  0x24   :  { %s54_s25 = sshll.u32 %s1814_s24, 4  ;;  %p1761_p2 = scmp.ne.s32.totalorder %s2072_s5, %s1760_s28  ;;  %s55_s25 = int_to_ptr.vmem [resolvable:$true] %s54_s25 }
  0x25   :  { %p1764_p3 = scmp.lt.u32.totalorder %s1760_s28, %s2072_s5 }
  0x27   :  { %p1766_p4 = pnand %p1764_p3, %p1761_p2 }
  0x29   :  { %1769 = shalt.err (!%p1766_p4)
}
  0x2a   :  { %s1770_s16 = scalar_lea.vmem %s55_s25, 2048  ;;  %p1775_p6 = scmp.lt.s32.totalorder %s55_s25, %s55_s25 }
  0x2b   :  { %p1771_p5 = scmp.ne.s32.totalorder %s55_s25, %s1770_s16  ;;  %p1776_p7 = scmp.lt.s32.totalorder %s1770_s16, %s1770_s16 }
  0x2d   :  { %p1777_p8 = por %p1776_p7, %p1775_p6 }
  0x2f   :  { %p1778_p9 = pnand %p1777_p8, %p1771_p5 }
  0x31   :  { %1781 = shalt.err (!%p1778_p9)
}
  0x32   :  { %s1815_s1 = smov 64   ;;  %s1816_s20 = smov 4  }
  0x33   :  { %60 = dma.hbm_to_vmem [thread:$0]  %s2072_s5, 2048, %s55_s25, [#allocation6], %s1815_s1, %s1815_s1, %s1816_s20  }
  0x34   :  { %1804 = dma.done.wait [#allocation3], 4096  }
  0x35   :  { %1805 = vsyncadd [#allocation3], 4294963200 }
  0x36   :  { %1806 = dma.done.wait [#allocation6], 6144  }
  0x37   :  { %1807 = vsyncadd [#allocation6], 4294961152  ;;  %v1548_v0 = vld [vmem:[#allocation2 + $0x4] ss:$8 sps:$4 sm:$0xff]   ;;  %v1550_v1 = vld [vmem:[#allocation2] ss:$8 sps:$4 sm:$0xff]  }
  0x38   :  { %333 = vmatprep.subr.bf16.mxu0 %v1548_v0  ;;  %v1551_v2 = vld [vmem:[#allocation2 + $0x14] ss:$8 sps:$4 sm:$0xff]   ;;  %v1553_v3 = vld [vmem:[#allocation2 + $0x10] ss:$8 sps:$4 sm:$0xff]   ;;  %v1554_v4 = vld [vmem:[#allocation2 + $0x24] ss:$8 sps:$4 sm:$0xff]  }
  0x39   :  { %334 = vmatpush1.bf16.msra.mxu0 %v1550_v1  ;;  %v1556_v5 = vld [vmem:[#allocation2 + $0x20] ss:$8 sps:$4 sm:$0xff]   ;;  %v1557_v6 = vld [vmem:[#allocation2 + $0x34] ss:$8 sps:$4 sm:$0xff]   ;;  %v1559_v7 = vld [vmem:[#allocation2 + $0x30] ss:$8 sps:$4 sm:$0xff]  }
  0x3a   :  { %335 = vmatprep.subr.bf16.mxu0 %v1551_v2  ;;  %v1560_v8 = vld [vmem:[#allocation2 + $0x44] ss:$8 sps:$4 sm:$0xff]   ;;  %v1562_v9 = vld [vmem:[#allocation2 + $0x40] ss:$8 sps:$4 sm:$0xff]   ;;  %v1563_v10 = vld [vmem:[#allocation2 + $0x54] ss:$8 sps:$4 sm:$0xff]  }
  0x3b   :  { %v1565_v11 = vld [vmem:[#allocation2 + $0x50] ss:$8 sps:$4 sm:$0xff]   ;;  %v1566_v12 = vld [vmem:[#allocation2 + $0x64] ss:$8 sps:$4 sm:$0xff]   ;;  %v1568_v14 = vld [vmem:[#allocation2 + $0x60] ss:$8 sps:$4 sm:$0xff]  }
  0x3c   :  { %v1598_v13 = vld [vmem:[%s2067_s0 + $0x4] ss:$8 sps:$4 sm:$0xff]   ;;  %v1569_v15 = vld [vmem:[#allocation2 + $0x74] ss:$8 sps:$4 sm:$0xff]   ;;  %v1571_v16 = vld [vmem:[#allocation2 + $0x70] ss:$8 sps:$4 sm:$0xff]  }
  0x3d   :  { %336 = vmatpush1.bf16.msra.mxu0 %v1553_v3  ;;  %365 = vmatprep.mubr.bf16.mxu0 %v1598_v13  ;;  %v1572_v17 = vld [vmem:[#allocation2 + $0x84] ss:$8 sps:$4 sm:$0xff]   ;;  %v1610_v19 = vld [vmem:[#allocation5] ss:$8 sps:$4 sm:$0xff]   ;;  %v1611_v20 = vld [vmem:[#allocation5 + $0x14] ss:$8 sps:$4 sm:$0xff]  }
  0x3e   :  { %337 = vmatprep.subr.bf16.mxu0 %v1554_v4  ;;  %v1608_v18 = vld [vmem:[#allocation5 + $0x4] ss:$8 sps:$4 sm:$0xff]   ;;  %v1613_v21 = vld [vmem:[#allocation5 + $0x10] ss:$8 sps:$4 sm:$0xff]   ;;  %v1574_v22 = vld [vmem:[#allocation2 + $0x80] ss:$8 sps:$4 sm:$0xff]  }
  0x3f   :  { %634 = vmatprep.subr.bf16.mxu1 %v1608_v18  ;;  %v1614_v23 = vld [vmem:[#allocation5 + $0x24] ss:$8 sps:$4 sm:$0xff]   ;;  %v1575_v24 = vld [vmem:[#allocation2 + $0x94] ss:$8 sps:$4 sm:$0xff]   ;;  %v1616_v25 = vld [vmem:[#allocation5 + $0x20] ss:$8 sps:$4 sm:$0xff]  }
  0x40   :  { %635 = vmatpush1.bf16.msra.mxu1 %v1610_v19  ;;  %v1577_v26 = vld [vmem:[#allocation2 + $0x90] ss:$8 sps:$4 sm:$0xff]   ;;  %v1617_v27 = vld [vmem:[#allocation5 + $0x34] ss:$8 sps:$4 sm:$0xff]   ;;  %v1578_v28 = vld [vmem:[#allocation2 + $0xa4] ss:$8 sps:$4 sm:$0xff]  }
  0x41   :  { %338 = vmatpush1.bf16.msra.mxu0 %v1556_v5  ;;  %636 = vmatprep.subr.bf16.mxu1 %v1611_v20  ;;  %v1619_v29 = vld [vmem:[#allocation5 + $0x30] ss:$8 sps:$4 sm:$0xff]   ;;  %v1580_v30 = vld [vmem:[#allocation2 + $0xa0] ss:$8 sps:$4 sm:$0xff]   ;;  %v1620_v31 = vld [vmem:[#allocation5 + $0x44] ss:$8 sps:$4 sm:$0xff]   ;;  %v123_v20 = vlaneseq }
  0x42   :  { %339 = vmatprep.subr.bf16.mxu0 %v1557_v6  ;;  %v1581_v32 = vld [vmem:[#allocation2 + $0xb4] ss:$8 sps:$4 sm:$0xff]   ;;  %v1583_v33 = vld [vmem:[#allocation2 + $0xb0] ss:$8 sps:$4 sm:$0xff]   ;;  %v1622_v34 = vld [vmem:[#allocation5 + $0x40] ss:$8 sps:$4 sm:$0xff]  }
  0x43   :  { %v1584_v35 = vld [vmem:[#allocation2 + $0xc4] ss:$8 sps:$4 sm:$0xff]   ;;  %v1623_v36 = vld [vmem:[#allocation5 + $0x54] ss:$8 sps:$4 sm:$0xff]   ;;  %v1625_v37 = vld [vmem:[#allocation5 + $0x50] ss:$8 sps:$4 sm:$0xff]  }
  0x44   :  { %637 = vmatpush1.bf16.msra.mxu1 %v1613_v21  ;;  %v1586_v38 = vld [vmem:[#allocation2 + $0xc0] ss:$8 sps:$4 sm:$0xff]   ;;  %v1626_v39 = vld [vmem:[#allocation5 + $0x64] ss:$8 sps:$4 sm:$0xff]   ;;  %v1587_v40 = vld [vmem:[#allocation2 + $0xd4] ss:$8 sps:$4 sm:$0xff]  }
  0x45   :  { %340 = vmatpush1.bf16.msra.mxu0 %v1559_v7  ;;  %638 = vmatprep.subr.bf16.mxu1 %v1614_v23  ;;  %v1628_v41 = vld [vmem:[#allocation5 + $0x60] ss:$8 sps:$4 sm:$0xff]   ;;  %v1589_v42 = vld [vmem:[#allocation2 + $0xd0] ss:$8 sps:$4 sm:$0xff]   ;;  %v1629_v43 = vld [vmem:[#allocation5 + $0x74] ss:$8 sps:$4 sm:$0xff]  }
  0x46   :  { %341 = vmatprep.subr.bf16.mxu0 %v1560_v8  ;;  %v1590_v44 = vld [vmem:[#allocation2 + $0xe4] ss:$8 sps:$4 sm:$0xff]   ;;  %v1631_v45 = vld [vmem:[#allocation5 + $0x70] ss:$8 sps:$4 sm:$0xff]   ;;  %v1592_v46 = vld [vmem:[#allocation2 + $0xe0] ss:$8 sps:$4 sm:$0xff]  }
  0x47   :  { %v1632_v47 = vld [vmem:[#allocation5 + $0x84] ss:$8 sps:$4 sm:$0xff]   ;;  %v1593_v48 = vld [vmem:[#allocation2 + $0xf4] ss:$8 sps:$4 sm:$0xff]   ;;  %v1634_v49 = vld [vmem:[#allocation5 + $0x80] ss:$8 sps:$4 sm:$0xff]  }
  0x48   :  { %639 = vmatpush1.bf16.msra.mxu1 %v1616_v25  ;;  %v1595_v50 = vld [vmem:[#allocation2 + $0xf0] ss:$8 sps:$4 sm:$0xff]   ;;  %v1635_v51 = vld [vmem:[#allocation5 + $0x94] ss:$8 sps:$4 sm:$0xff]   ;;  %v1596_v52 = vld [vmem:[%s2067_s0] ss:$8 sps:$4 sm:$0xff]  }
  0x49   :  { %342 = vmatpush1.bf16.msra.mxu0 %v1562_v9  ;;  %640 = vmatprep.subr.bf16.mxu1 %v1617_v27  ;;  %v1637_v53 = vld [vmem:[#allocation5 + $0x90] ss:$8 sps:$4 sm:$0xff]   ;;  %v1599_v54 = vld [vmem:[%s2067_s0 + $0x14] ss:$8 sps:$4 sm:$0xff]   ;;  %v1638_v55 = vld [vmem:[#allocation5 + $0xa4] ss:$8 sps:$4 sm:$0xff]  }
  0x4a   :  { %343 = vmatprep.subr.bf16.mxu0 %v1563_v10  ;;  %v1640_v56 = vld [vmem:[#allocation5 + $0xa0] ss:$8 sps:$4 sm:$0xff]   ;;  %v1641_v57 = vld [vmem:[#allocation5 + $0xb4] ss:$8 sps:$4 sm:$0xff]   ;;  %v1601_v58 = vld [vmem:[%s2067_s0 + $0x10] ss:$8 sps:$4 sm:$0xff]  }
  0x4b   :  { %v1643_v59 = vld [vmem:[#allocation5 + $0xb0] ss:$8 sps:$4 sm:$0xff]   ;;  %v1602_v60 = vld [vmem:[%s2067_s0 + $0x24] ss:$8 sps:$4 sm:$0xff]   ;;  %v1646_v62 = vld [vmem:[#allocation5 + $0xc0] ss:$8 sps:$4 sm:$0xff]  }
  0x4c   :  { %641 = vmatpush1.bf16.msra.mxu1 %v1619_v29  ;;  %v1644_v61 = vld [vmem:[#allocation5 + $0xc4] ss:$8 sps:$4 sm:$0xff]   ;;  %v1647_v63 = vld [vmem:[#allocation5 + $0xd4] ss:$8 sps:$4 sm:$0xff]   ;;  %v1604_v0 = vld [vmem:[%s2067_s0 + $0x20] ss:$8 sps:$4 sm:$0xff]  }
  0x4d   :  { %344 = vmatpush1.bf16.msra.mxu0 %v1565_v11  ;;  %642 = vmatprep.subr.bf16.mxu1 %v1620_v31  ;;  %v1605_v1 = vld [vmem:[%s2067_s0 + $0x34] ss:$8 sps:$4 sm:$0xff]   ;;  %v1607_v2 = vld [vmem:[%s2067_s0 + $0x30] ss:$8 sps:$4 sm:$0xff]   ;;  %v1650_v4 = vld [vmem:[#allocation5 + $0xe4] ss:$8 sps:$4 sm:$0xff]  }
  0x4e   :  { %345 = vmatprep.subr.bf16.mxu0 %v1566_v12  ;;  %v1649_v3 = vld [vmem:[#allocation5 + $0xd0] ss:$8 sps:$4 sm:$0xff]   ;;  %v1652_v5 = vld [vmem:[#allocation5 + $0xe0] ss:$8 sps:$4 sm:$0xff]   ;;  %v1653_v6 = vld [vmem:[#allocation5 + $0xf4] ss:$8 sps:$4 sm:$0xff]  }
  0x4f   :  { %v1655_v7 = vld [vmem:[#allocation5 + $0xf0] ss:$8 sps:$4 sm:$0xff]   ;;  %v1656_v8 = vld [vmem:[#allocation7 + $0x40] sm:$0xff]   ;;  %v1658_v10 = vld [vmem:[#allocation7 + $0x48] sm:$0xff]   ;;  %v1952_v21 = vshrl.u32 %v123_v20, 7  ;;  %vm1130_vm0 = vcmask 523264  }
  0x50   :  { %643 = vmatpush1.bf16.msra.mxu1 %v1622_v34  ;;  %v1657_v9 = vld [vmem:[#allocation7] sm:$0xff]   ;;  %v1659_v11 = vld [vmem:[#allocation7 + $0x8] sm:$0xff]   ;;  %v1660_v12 = vld [vmem:[#allocation7 + $0x50] sm:$0xff]  }
  0x51   :  { %346 = vmatpush1.bf16.msra.mxu0 %v1568_v14  ;;  %644 = vmatprep.subr.bf16.mxu1 %v1623_v36  ;;  %v1661_v13 = vld [vmem:[#allocation7 + $0x10] sm:$0xff]   ;;  %v1662_v14 = vld [vmem:[#allocation7 + $0x58] sm:$0xff]   ;;  %v1666_v18 = vld [vmem:[#allocation7 + $0x68] sm:$0xff]  }
  0x52   :  { %347 = vmatprep.subr.bf16.mxu0 %v1569_v15  ;;  %v1663_v15 = vld [vmem:[#allocation7 + $0x18] sm:$0xff]   ;;  %v1667_v19 = vld [vmem:[#allocation7 + $0x28] sm:$0xff]   ;;  %v121_v23 = vld [vmem:[%s2069_s2] sm:$0x3] }
  0x54   :  { %645 = vmatpush1.bf16.msra.mxu1 %v1625_v37 }
  0x55   :  { %348 = vmatpush1.bf16.msra.mxu0 %v1571_v16  ;;  %646 = vmatprep.subr.bf16.mxu1 %v1626_v39  ;;  %v1664_v16 = vld [vmem:[#allocation7 + $0x60] sm:$0xff]  }
  0x56   :  { %349 = vmatprep.subr.bf16.mxu0 %v1572_v17  ;;  %v1665_v17 = vld [vmem:[#allocation7 + $0x20] sm:$0xff]  }
  0x58   :  { %647 = vmatpush1.bf16.msra.mxu1 %v1628_v41 }
  0x59   :  { %350 = vmatpush1.bf16.msra.mxu0 %v1574_v22  ;;  %648 = vmatprep.subr.bf16.mxu1 %v1629_v43  ;;  %v125_v22 = vsub.s32 0, %v1952_v21 }
  0x5a   :  { %351 = vmatprep.subr.bf16.mxu0 %v1575_v24  ;;  %v129_v24 = vsub.s32 1, %v1952_v21 }
  0x5b   :  { %v126_v25 = vrot.slane %v121_v23, %v125_v22 }
  0x5c   :  { %649 = vmatpush1.bf16.msra.mxu1 %v1631_v45 }
  0x5d   :  { %352 = vmatpush1.bf16.msra.mxu0 %v1577_v26  ;;  %650 = vmatprep.subr.bf16.mxu1 %v1632_v47  ;;  %v130_v26 = vrot.slane %v121_v23, %v129_v24  ;;  %v1669_v23 = vld [vmem:[#allocation7 + $0x30] sm:$0xff]  }
  0x5e   :  { %353 = vmatprep.subr.bf16.mxu0 %v1578_v28 }
  0x60   :  { %651 = vmatpush1.bf16.msra.mxu1 %v1634_v49 }
  0x61   :  { %354 = vmatpush1.bf16.msra.mxu0 %v1580_v30  ;;  %652 = vmatprep.subr.bf16.mxu1 %v1635_v51 }
  0x62   :  { %355 = vmatprep.subr.bf16.mxu0 %v1581_v32 }
  0x64   :  { %653 = vmatpush1.bf16.msra.mxu1 %v1637_v53 }
  0x65   :  { %356 = vmatpush1.bf16.msra.mxu0 %v1583_v33  ;;  %654 = vmatprep.subr.bf16.mxu1 %v1638_v55 }
  0x66   :  { %357 = vmatprep.subr.bf16.mxu0 %v1584_v35 }
  0x68   :  { %655 = vmatpush1.bf16.msra.mxu1 %v1640_v56 }
  0x69   :  { %358 = vmatpush1.bf16.msra.mxu0 %v1586_v38  ;;  %656 = vmatprep.subr.bf16.mxu1 %v1641_v57 }
  0x6a   :  { %359 = vmatprep.subr.bf16.mxu0 %v1587_v40 }
  0x6c   :  { %657 = vmatpush1.bf16.msra.mxu1 %v1643_v59 }
  0x6d   :  { %360 = vmatpush1.bf16.msra.mxu0 %v1589_v42  ;;  %658 = vmatprep.subr.bf16.mxu1 %v1644_v61 }
  0x6e   :  { %361 = vmatprep.subr.bf16.mxu0 %v1590_v44 }
  0x70   :  { %659 = vmatpush1.bf16.msra.mxu1 %v1646_v62 }
  0x71   :  { %362 = vmatpush1.bf16.msra.mxu0 %v1592_v46  ;;  %660 = vmatprep.subr.bf16.mxu1 %v1647_v63 }
  0x72   :  { %363 = vmatprep.subr.bf16.mxu0 %v1593_v48 }
  0x74   :  { %661 = vmatpush1.bf16.msra.mxu1 %v1649_v3 }
  0x75   :  { %364 = vmatpush1.bf16.msra.mxu0 %v1595_v50  ;;  %662 = vmatprep.subr.bf16.mxu1 %v1650_v4 }
  0x76   :  { %1440 = vmatprep.subr.bf16.mxu0 %v1656_v8 }
  0x78   :  { %366 = vmatmul.mubr.bf16.vlgmr.msra.gmra.mrb[0].mxu0 %v1596_v52  ;;  %663 = vmatpush1.bf16.msra.mxu1 %v1652_v5 }
  0x79   :  { %375 = vmatprep.mubr.bf16.mxu0 %v1599_v54  ;;  %664 = vmatprep.subr.bf16.mxu1 %v1653_v6 }
  0x7a   :  { %1441 = vmatpush3.bf16.msra.mxu0 %v1657_v9 }
  0x7b   :  { %1442 = vmatprep.subr.bf16.mxu0 %v1658_v10 }
  0x7c   :  { %665 = vmatpush1.bf16.msra.mxu1 %v1655_v7 }
  0x7e   :  { %1443 = vmatpush3.bf16.msra.mxu0 %v1659_v11 }
  0x7f   :  { %1444 = vmatprep.subr.bf16.mxu0 %v1660_v12 }
  0x80   :  { %376 = vmatmul.mubr.bf16.gmra.mrb[4].mxu0 %v1601_v58 }
  0x81   :  { %385 = vmatprep.mubr.bf16.mxu0 %v1602_v60 }
  0x82   :  { %1445 = vmatpush3.bf16.msra.mxu0 %v1661_v13 }
  0x83   :  { %1446 = vmatprep.subr.bf16.mxu0 %v1662_v14 }
  0x86   :  { %1447 = vmatpush3.bf16.msra.mxu0 %v1663_v15 }
  0x87   :  { %1448 = vmatprep.subr.bf16.mxu0 %v1664_v16 }
  0x88   :  { %386 = vmatmul.mubr.bf16.gmra.mrb[8].mxu0 %v1604_v0 }
  0x89   :  { %395 = vmatprep.mubr.bf16.mxu0 %v1605_v1 }
  0x8a   :  { %1449 = vmatpush3.bf16.msra.mxu0 %v1665_v17 }
  0x8b   :  { %1450 = vmatprep.subr.bf16.mxu0 %v1666_v18 }
  0x8e   :  { %1451 = vmatpush3.bf16.msra.mxu0 %v1667_v19  ;;  %v1668_v19 = vld [vmem:[#allocation7 + $0x70] sm:$0xff]  }
  0x8f   :  { %1452 = vmatprep.subr.bf16.mxu0 %v1668_v19 }
  0x90   :  { %396 = vmatmul.mubr.bf16.gmra.mrb[12].mxu0 %v1607_v2 }
  0x92   :  { %1453 = vmatpush3.bf16.msra.mxu0 %v1669_v23 }
 0x14b   :  { %v367_v27 = vpop.f32.mrb[0].mxu0 }
 0x14c   :  { %v368_v28 = vadd.f32 %v367_v27, %v126_v25  ;;  %v369_v29 = vpop.f32.mrb[1].mxu0  ;;  %v1670_v27 = vld [vmem:[#allocation7 + $0x78] sm:$0xff]  }
 0x14d   :  { %v370_v30 = vadd.f32 %v369_v29, %v130_v26  ;;  %v371_v31 = vpop.f32.mrb[2].mxu0  ;;  %1454 = vmatprep.subr.bf16.mxu0 %v1670_v27  ;;  %v1674_v29 = vld [vmem:[%s2074_s7 + $0x10] sm:$0xff]  }
 0x14e   :  { %v372_v32 = vadd.f32 %v371_v31, %v126_v25  ;;  %v373_v33 = vpop.f32.mrb[3].mxu0  ;;  %v406_v35 = vmax.f32 %v368_v28, 0.0  ;;  %v1671_v28 = vld [vmem:[#allocation7 + $0x38] sm:$0xff]  }
 0x14f   :  { %v374_v34 = vadd.f32 %v373_v33, %v130_v26  ;;  %v407_v37 = vmax.f32 %v370_v30, 0.0  ;;  %1455 = vmatpush3.bf16.msra.mxu0 %v1671_v28  ;;  %v462_v30 = vld [vmem:[%s2071_s4] sm:$0x3]  ;;  %v1675_v28 = vld [vmem:[%s2074_s7 + $0x18] sm:$0xff]  }
 0x150   :  { %v408_v36 = vmax.f32 %v372_v32, 0.0  ;;  %v467_v31 = vrot.slane %v462_v30, %v125_v22  ;;  %v471_v32 = vrot.slane %v462_v30, %v129_v24  ;;  %v1679_v30 = vld [vmem:[%s2074_s7 + $0x38] sm:$0xff]  }
 0x151   :  { %v409_v38 = vmax.f32 %v374_v34, 0.0 }
 0x152   :  { %v422_v39 = vpack.c.bf16 %v408_v36, %v406_v35 }
 0x153   :  { %v377_v40 = vpop.f32.mrb[4].mxu0  ;;  %v423_v41 = vpack.c.bf16 %v409_v38, %v407_v37 }
 0x154   :  { %v378_v42 = vadd.f32 %v377_v40, %v126_v25  ;;  %v379_v43 = vpop.f32.mrb[5].mxu0 }
 0x155   :  { %v380_v44 = vadd.f32 %v379_v43, %v130_v26  ;;  %v381_v45 = vpop.f32.mrb[6].mxu0  ;;  %666 = vmatprep.mubr.bf16.mxu1 %v423_v41 }
 0x156   :  { %v382_v46 = vadd.f32 %v381_v45, %v126_v25  ;;  %v383_v47 = vpop.f32.mrb[7].mxu0  ;;  %667 = vmatmul.mubr.bf16.vlgmr.msra.gmra.mrb[0].mxu1 %v422_v39  ;;  %v410_v49 = vmax.f32 %v378_v42, 0.0 }
 0x157   :  { %v384_v48 = vadd.f32 %v383_v47, %v130_v26  ;;  %v411_v51 = vmax.f32 %v380_v44, 0.0 }
 0x158   :  { %v412_v50 = vmax.f32 %v382_v46, 0.0 }
 0x159   :  { %v413_v52 = vmax.f32 %v384_v48, 0.0 }
 0x15a   :  { %v424_v53 = vpack.c.bf16 %v412_v50, %v410_v49 }
 0x15b   :  { %v425_v54 = vpack.c.bf16 %v413_v52, %v411_v51  ;;  %v387_v55 = vpop.f32.mrb[8].mxu0 }
 0x15c   :  { %v388_v56 = vadd.f32 %v387_v55, %v126_v25  ;;  %v389_v57 = vpop.f32.mrb[9].mxu0 }
 0x15d   :  { %v390_v58 = vadd.f32 %v389_v57, %v130_v26  ;;  %v391_v59 = vpop.f32.mrb[10].mxu0  ;;  %676 = vmatprep.mubr.bf16.mxu1 %v425_v54 }
 0x15e   :  { %v392_v60 = vadd.f32 %v391_v59, %v126_v25  ;;  %v393_v61 = vpop.f32.mrb[11].mxu0  ;;  %677 = vmatmul.mubr.bf16.gmra.mrb[4].mxu1 %v424_v53  ;;  %v414_v63 = vmax.f32 %v388_v56, 0.0 }
 0x15f   :  { %v394_v62 = vadd.f32 %v393_v61, %v130_v26  ;;  %v415_v1 = vmax.f32 %v390_v58, 0.0 }
 0x160   :  { %v416_v0 = vmax.f32 %v392_v60, 0.0 }
 0x161   :  { %v417_v2 = vmax.f32 %v394_v62, 0.0 }
 0x162   :  { %v426_v3 = vpack.c.bf16 %v416_v0, %v414_v63 }
 0x163   :  { %v427_v4 = vpack.c.bf16 %v417_v2, %v415_v1  ;;  %v397_v5 = vpop.f32.mrb[12].mxu0 }
 0x164   :  { %v398_v6 = vadd.f32 %v397_v5, %v126_v25  ;;  %v399_v7 = vpop.f32.mrb[13].mxu0 }
 0x165   :  { %v400_v8 = vadd.f32 %v399_v7, %v130_v26  ;;  %v401_v9 = vpop.f32.mrb[14].mxu0  ;;  %686 = vmatprep.mubr.bf16.mxu1 %v427_v4 }
 0x166   :  { %v402_v10 = vadd.f32 %v401_v9, %v126_v25  ;;  %v403_v11 = vpop.f32.mrb[15].mxu0  ;;  %687 = vmatmul.mubr.bf16.gmra.mrb[8].mxu1 %v426_v3  ;;  %v418_v13 = vmax.f32 %v398_v6, 0.0  ;;  %v1672_v25 = vld [vmem:[%s2074_s7] sm:$0xff]  }
 0x167   :  { %v404_v12 = vadd.f32 %v403_v11, %v130_v26  ;;  %v419_v15 = vmax.f32 %v400_v8, 0.0  ;;  %v1673_v26 = vld [vmem:[%s2074_s7 + $0x8] sm:$0xff]   ;;  %1500 = vmatprep.subr.bf16.mxu1 %v1672_v25 }
 0x168   :  { %v420_v14 = vmax.f32 %v402_v10, 0.0  ;;  %1501 = vmatpush3.bf16.msra.mxu1 %v1672_v25  ;;  %v1676_v25 = vld [vmem:[%s2074_s7 + $0x20] sm:$0xff]  }
 0x169   :  { %v421_v16 = vmax.f32 %v404_v12, 0.0  ;;  %1502 = vmatprep.subr.bf16.mxu1 %v1673_v26 }
 0x16a   :  { %v428_v17 = vpack.c.bf16 %v420_v14, %v418_v13 }
 0x16b   :  { %v429_v18 = vpack.c.bf16 %v421_v16, %v419_v15 }
 0x16c   :  { %1503 = vmatpush3.bf16.msra.mxu1 %v1673_v26  ;;  %v1677_v26 = vld [vmem:[%s2074_s7 + $0x28] sm:$0xff]  }
 0x16d   :  { %696 = vmatprep.mubr.bf16.mxu1 %v429_v18  ;;  %1504 = vmatprep.subr.bf16.mxu1 %v1674_v29 }
 0x16e   :  { %697 = vmatmul.mubr.bf16.gmra.mrb[12].mxu1 %v428_v17 }
 0x170   :  { %1505 = vmatpush3.bf16.msra.mxu1 %v1674_v29  ;;  %v1678_v29 = vld [vmem:[%s2074_s7 + $0x30] sm:$0xff]  }
 0x171   :  { %1506 = vmatprep.subr.bf16.mxu1 %v1675_v28 }
 0x174   :  { %1507 = vmatpush3.bf16.msra.mxu1 %v1675_v28 }
 0x175   :  { %1508 = vmatprep.subr.bf16.mxu1 %v1676_v25 }
 0x178   :  { %1509 = vmatpush3.bf16.msra.mxu1 %v1676_v25 }
 0x179   :  { %1510 = vmatprep.subr.bf16.mxu1 %v1677_v26 }
 0x17c   :  { %1511 = vmatpush3.bf16.msra.mxu1 %v1677_v26 }
 0x17d   :  { %1512 = vmatprep.subr.bf16.mxu1 %v1678_v29 }
 0x180   :  { %1513 = vmatpush3.bf16.msra.mxu1 %v1678_v29 }
 0x181   :  { %1514 = vmatprep.subr.bf16.mxu1 %v1679_v30 }
 0x184   :  { %1515 = vmatpush3.bf16.msra.mxu1 %v1679_v30 }
 0x229   :  { %v668_v33 = vpop.f32.mrb[0].mxu1 }
 0x22a   :  { %v669_v34 = vadd.f32 %v668_v33, %v467_v31  ;;  %v670_v35 = vpop.f32.mrb[1].mxu1  ;;  %v1405_v33 = vld [vmem:[%s2073_s6] ss:$0 sm:$0xff] }
 0x22b   :  { %v671_v36 = vadd.f32 %v670_v35, %v471_v32  ;;  %v672_v37 = vpop.f32.mrb[2].mxu1 }
 0x22c   :  { %v673_v38 = vadd.f32 %v672_v37, %v467_v31  ;;  %v674_v39 = vpop.f32.mrb[3].mxu1  ;;  %v707_v41 = vmax.f32 %v669_v34, 0.0 }
 0x22d   :  { %v675_v40 = vadd.f32 %v674_v39, %v471_v32  ;;  %v708_v43 = vmax.f32 %v671_v36, 0.0 }
 0x22e   :  { %v709_v42 = vmax.f32 %v673_v38, 0.0 }
 0x22f   :  { %v710_v44 = vmax.f32 %v675_v40, 0.0 }
 0x230   :  { %v723_v45 = vpack.c.bf16 %v709_v42, %v707_v41 }
 0x231   :  { %v724_v46 = vpack.c.bf16 %v710_v44, %v708_v43  ;;  %v678_v47 = vpop.f32.mrb[4].mxu1 }
 0x232   :  { %v679_v48 = vadd.f32 %v678_v47, %v467_v31  ;;  %v680_v22 = vpop.f32.mrb[5].mxu1 }
 0x233   :  { %v681_v49 = vadd.f32 %v680_v22, %v471_v32  ;;  %v682_v21 = vpop.f32.mrb[6].mxu1  ;;  %898 = vmatprep.mubr.bf16.mxu0 %v724_v46 }
 0x234   :  { %v683_v24 = vadd.f32 %v682_v21, %v467_v31  ;;  %v684_v50 = vpop.f32.mrb[7].mxu1  ;;  %899 = vmatmul.mubr.bf16.vlgmr.msra.gmra.mrb[16].mxu0 %v723_v45  ;;  %v711_v52 = vmax.f32 %v679_v48, 0.0 }
 0x235   :  { %v685_v51 = vadd.f32 %v684_v50, %v471_v32  ;;  %v712_v54 = vmax.f32 %v681_v49, 0.0 }
 0x236   :  { %v713_v53 = vmax.f32 %v683_v24, 0.0 }
 0x237   :  { %v714_v55 = vmax.f32 %v685_v51, 0.0 }
 0x238   :  { %v725_v56 = vpack.c.bf16 %v713_v53, %v711_v52 }
 0x239   :  { %v726_v57 = vpack.c.bf16 %v714_v55, %v712_v54  ;;  %v688_v58 = vpop.f32.mrb[8].mxu1 }
 0x23a   :  { %v689_v59 = vadd.f32 %v688_v58, %v467_v31  ;;  %v690_v60 = vpop.f32.mrb[9].mxu1 }
 0x23b   :  { %v691_v61 = vadd.f32 %v690_v60, %v471_v32  ;;  %v692_v62 = vpop.f32.mrb[10].mxu1  ;;  %906 = vmatprep.mubr.bf16.mxu0 %v726_v57 }
 0x23c   :  { %v693_v63 = vadd.f32 %v692_v62, %v467_v31  ;;  %v694_v0 = vpop.f32.mrb[11].mxu1  ;;  %907 = vmatmul.mubr.bf16.gmra.mrb[20].mxu0 %v725_v56  ;;  %v715_v2 = vmax.f32 %v689_v59, 0.0  ;;  %v1681_v56 = vld [vmem:[%s2076_s9 + $0x8] sm:$0xff]  }
 0x23d   :  { %v695_v1 = vadd.f32 %v694_v0, %v471_v32  ;;  %v716_v4 = vmax.f32 %v691_v61, 0.0 }
 0x23e   :  { %v717_v3 = vmax.f32 %v693_v63, 0.0 }
 0x23f   :  { %v718_v5 = vmax.f32 %v695_v1, 0.0 }
 0x240   :  { %v727_v6 = vpack.c.bf16 %v717_v3, %v715_v2 }
 0x241   :  { %v728_v7 = vpack.c.bf16 %v718_v5, %v716_v4  ;;  %v698_v8 = vpop.f32.mrb[12].mxu1 }
 0x242   :  { %v699_v9 = vadd.f32 %v698_v8, %v467_v31  ;;  %v700_v10 = vpop.f32.mrb[13].mxu1 }
 0x243   :  { %v701_v11 = vadd.f32 %v700_v10, %v471_v32  ;;  %v702_v12 = vpop.f32.mrb[14].mxu1  ;;  %914 = vmatprep.mubr.bf16.mxu0 %v728_v7 }
 0x244   :  { %v703_v13 = vadd.f32 %v702_v12, %v467_v31  ;;  %v704_v14 = vpop.f32.mrb[15].mxu1  ;;  %915 = vmatmul.mubr.bf16.gmra.mrb[24].mxu0 %v727_v6  ;;  %v719_v16 = vmax.f32 %v699_v9, 0.0  ;;  %v1680_v31 = vld [vmem:[%s2076_s9] sm:$0xff]   ;;  %v1683_v12 = vld [vmem:[%s2076_s9 + $0x18] sm:$0xff]  }
 0x245   :  { %v705_v15 = vadd.f32 %v704_v14, %v471_v32  ;;  %v720_v18 = vmax.f32 %v701_v11, 0.0  ;;  %1524 = vmatprep.subr.bf16.mxu1 %v1680_v31  ;;  %v1682_v11 = vld [vmem:[%s2076_s9 + $0x10] sm:$0xff]  }
 0x246   :  { %v721_v17 = vmax.f32 %v703_v13, 0.0  ;;  %v1422_v13 = vld [vmem:[%s2075_s8] ss:$0 sm:$0xff] }
 0x247   :  { %v722_v19 = vmax.f32 %v705_v15, 0.0 }
 0x248   :  { %v729_v23 = vpack.c.bf16 %v721_v17, %v719_v16 }
 0x249   :  { %v730_v27 = vpack.c.bf16 %v722_v19, %v720_v18 }
 0x24b   :  { %922 = vmatprep.mubr.bf16.mxu0 %v730_v27 }
 0x24c   :  { %923 = vmatmul.mubr.bf16.gmra.mrb[28].mxu0 %v729_v23 }
 0x307   :  { %v1456_v32 = vpop.f32.mrb[16].mxu0 }
 0x308   :  { %v1457_v34 = vpop.f32.mrb[17].mxu0 }
 0x309   :  { %v1458_v35 = vadd.f32 %v1457_v34, %v1456_v32  ;;  %v1459_v36 = vpop.f32.mrb[18].mxu0 }
 0x30a   :  { %v1460_v37 = vpop.f32.mrb[19].mxu0 }
 0x30b   :  { %v901_v38 = vadd.f32 %v1458_v35, %v1405_v33  ;;  %v1461_v39 = vadd.f32 %v1460_v37, %v1459_v36 }
 0x30d   :  { %v904_v40 = vadd.f32 %v1461_v39, %v1405_v33  ;;  %v931_v41 = vmax.f32 %v901_v38, 0.0 }
 0x30f   :  { %v932_v42 = vmax.f32 %v904_v40, 0.0  ;;  %v1462_v43 = vpop.f32.mrb[20].mxu0 }
 0x310   :  { %v1463_v44 = vpop.f32.mrb[21].mxu0 }
 0x311   :  { %v1464_v45 = vadd.f32 %v1463_v44, %v1462_v43  ;;  %v1465_v46 = vpop.f32.mrb[22].mxu0  ;;  %v939_v47 = vpack.c.bf16 %v932_v42, %v931_v41 }
 0x312   :  { %v1466_v48 = vpop.f32.mrb[23].mxu0 }
 0x313   :  { %v909_v22 = vadd.f32 %v1464_v45, %v1405_v33  ;;  %v1467_v49 = vadd.f32 %v1466_v48, %v1465_v46  ;;  %1516 = vmatprep.mubr.bf16.mxu1 %v939_v47  ;;  %v1431_v46 = vld [vmem:[%s2077_s10] ss:$0 sm:$0xff]  ;;  %v1217_v47 = vand.u32 127, %v123_v20  ;;  %s1817_s10 = smov [#allocation8]  }
 0x314   :  { %s1320_s21 = sshll.u32 %s1817_s10, 4  ;;  %s1321_s21 = int_to_ptr.vmem [resolvable:$true] %s1320_s21 }
 0x315   :  { %v912_v21 = vadd.f32 %v1467_v49, %v1405_v33  ;;  %v933_v24 = vmax.f32 %v909_v22, 0.0  ;;  %vm1218_vm1 = vcmp.lt.s32.totalorder %v1217_v47, 10  ;;  %s1782_s22 = scalar_lea.vmem %s1321_s21, 1024  ;;  %p1787_p11 = scmp.lt.s32.totalorder %s1321_s21, %s1321_s21 }
 0x316   :  { %p1783_p10 = scmp.ne.s32.totalorder %s1321_s21, %s1782_s22  ;;  %p1788_p12 = scmp.lt.s32.totalorder %s1782_s22, %s1782_s22 }
 0x317   :  { %v934_v50 = vmax.f32 %v912_v21, 0.0  ;;  %v1468_v51 = vpop.f32.mrb[24].mxu0 }
 0x318   :  { %v1469_v52 = vpop.f32.mrb[25].mxu0  ;;  %p1789_p13 = por %p1788_p12, %p1787_p11 }
 0x319   :  { %v940_v53 = vpack.c.bf16 %v934_v50, %v933_v24  ;;  %v1470_v54 = vadd.f32 %v1469_v52, %v1468_v51  ;;  %v1471_v55 = vpop.f32.mrb[26].mxu0 }
 0x31a   :  { %v1472_v57 = vpop.f32.mrb[27].mxu0  ;;  %p1790_p0 = pnand %p1789_p13, %p1783_p10 }
 0x31b   :  { %v917_v58 = vadd.f32 %v1470_v54, %v1405_v33  ;;  %v1473_v59 = vadd.f32 %v1472_v57, %v1471_v55  ;;  %1517 = vmatmul.mubr.bf16.vlgmr.msra.gmra.mrb[16].mxu1 %v940_v53 }
 0x31c   :  { %1525 = vmatpush3.bf16.msra.mxu1 %v1680_v31 }
 0x31d   :  { %v920_v60 = vadd.f32 %v1473_v59, %v1405_v33  ;;  %1526 = vmatprep.subr.bf16.mxu1 %v1681_v56  ;;  %v935_v61 = vmax.f32 %v917_v58, 0.0 }
 0x31f   :  { %v936_v62 = vmax.f32 %v920_v60, 0.0  ;;  %v1474_v63 = vpop.f32.mrb[28].mxu0 }
 0x320   :  { %v1475_v0 = vpop.f32.mrb[29].mxu0  ;;  %1527 = vmatpush3.bf16.msra.mxu1 %v1681_v56 }
 0x321   :  { %v1476_v1 = vadd.f32 %v1475_v0, %v1474_v63  ;;  %v1477_v2 = vpop.f32.mrb[30].mxu0  ;;  %v941_v3 = vpack.c.bf16 %v936_v62, %v935_v61  ;;  %1528 = vmatprep.subr.bf16.mxu1 %v1682_v11 }
 0x322   :  { %v1478_v4 = vpop.f32.mrb[31].mxu0 }
 0x323   :  { %v925_v5 = vadd.f32 %v1476_v1, %v1405_v33  ;;  %v1479_v6 = vadd.f32 %v1478_v4, %v1477_v2  ;;  %1520 = vmatprep.mubr.bf16.mxu1 %v941_v3 }
 0x324   :  { %1529 = vmatpush3.bf16.msra.mxu1 %v1682_v11 }
 0x325   :  { %v928_v7 = vadd.f32 %v1479_v6, %v1405_v33  ;;  %v937_v8 = vmax.f32 %v925_v5, 0.0  ;;  %1530 = vmatprep.subr.bf16.mxu1 %v1683_v12 }
 0x327   :  { %v938_v9 = vmax.f32 %v928_v7, 0.0 }
 0x328   :  { %1531 = vmatpush3.bf16.msra.mxu1 %v1683_v12 }
 0x329   :  { %v942_v10 = vpack.c.bf16 %v938_v9, %v937_v8 }
 0x32b   :  { %1521 = vmatmul.mubr.bf16.gmra.mrb[20].mxu1 %v942_v10 }
 0x3ee   :  { %v1518_v14 = vpop.f32.mrb[16].mxu1 }
 0x3ef   :  { %v1057_v15 = vadd.f32 %v1518_v14, %v1422_v13  ;;  %v1048_v16 = vpop.f32.mrb[17].mxu1 }
 0x3f0   :  { %v1049_v17 = vadd.f32 %v1422_v13, %v1048_v16  ;;  %v1519_v18 = vpop.f32.mrb[18].mxu1 }
 0x3f1   :  { %v1060_v19 = vadd.f32 %v1519_v18, %v1422_v13  ;;  %v1051_v23 = vpop.f32.mrb[19].mxu1  ;;  %v1081_v28 = vmax.f32 %v1057_v15, 0.0 }
 0x3f2   :  { %v1052_v27 = vadd.f32 %v1422_v13, %v1051_v23  ;;  %v1079_v26 = vmax.f32 %v1049_v17, 0.0 }
 0x3f3   :  { %v1082_v25 = vmax.f32 %v1060_v19, 0.0 }
 0x3f4   :  { %v1080_v29 = vmax.f32 %v1052_v27, 0.0 }
 0x3f5   :  { %v1088_v30 = vpack.c.bf16 %v1082_v25, %v1081_v28 }
 0x3f6   :  { %v1087_v31 = vpack.c.bf16 %v1080_v29, %v1079_v26 }
 0x3f8   :  { %1532 = vmatprep.mubr.msk.bf16.mxu1 %vm1130_vm0, %v1087_v31 }
 0x3f9   :  { %1533 = vmatmul.mubr.msk.bf16.vlgmr.msra.gmra.mrb[24].mxu1 %vm1130_vm0, %v1088_v30 }
 0x3fe   :  { %v1522_v32 = vpop.f32.mrb[20].mxu1 }
 0x3ff   :  { %v1073_v33 = vadd.f32 %v1522_v32, %v1422_v13  ;;  %v1064_v34 = vpop.f32.mrb[21].mxu1 }
 0x400   :  { %v1065_v35 = vadd.f32 %v1422_v13, %v1064_v34  ;;  %v1523_v36 = vpop.f32.mrb[22].mxu1 }
 0x401   :  { %v1076_v37 = vadd.f32 %v1523_v36, %v1422_v13  ;;  %v1067_v38 = vpop.f32.mrb[23].mxu1  ;;  %v1085_v40 = vmax.f32 %v1073_v33, 0.0 }
 0x402   :  { %v1068_v39 = vadd.f32 %v1422_v13, %v1067_v38  ;;  %v1083_v42 = vmax.f32 %v1065_v35, 0.0 }
 0x403   :  { %v1086_v41 = vmax.f32 %v1076_v37, 0.0 }
 0x404   :  { %v1084_v43 = vmax.f32 %v1068_v39, 0.0 }
 0x405   :  { %v1090_v44 = vpack.c.bf16 %v1086_v41, %v1085_v40 }
 0x406   :  { %v1089_v45 = vpack.c.bf16 %v1084_v43, %v1083_v42 }
 0x408   :  { %1536 = vmatprep.mubr.msk.bf16.mxu1 %vm1130_vm0, %v1089_v45 }
 0x409   :  { %1537 = vmatmul.mubr.msk.bf16.gmra.mrb[28].mxu1 %vm1130_vm0, %v1090_v44 }
 0x4cc   :  { %v1534_v48 = vpop.f32.mrb[24].mxu1 }
 0x4cd   :  { %v1186_v22 = vadd.f32 %v1534_v48, %v1431_v46  ;;  %v1177_v49 = vpop.f32.mrb[25].mxu1 }
 0x4ce   :  { %v1178_v21 = vadd.f32 %v1431_v46, %v1177_v49  ;;  %v1535_v24 = vpop.f32.mrb[26].mxu1 }
 0x4cf   :  { %v1210_v50 = vmax.f32 %v1186_v22, 0.0  ;;  %v1189_v51 = vadd.f32 %v1535_v24, %v1431_v46  ;;  %v1180_v52 = vpop.f32.mrb[27].mxu1 }
 0x4d0   :  { %v1208_v53 = vmax.f32 %v1178_v21, 0.0  ;;  %v1181_v54 = vadd.f32 %v1431_v46, %v1180_v52 }
 0x4d1   :  { %v1211_v55 = vmax.f32 %v1189_v51, 0.0  ;;  %v1221_v56 = vsel %vm1218_vm1, %v1210_v50, -inf }
 0x4d2   :  { %v1209_v57 = vmax.f32 %v1181_v54, 0.0  ;;  %1231 = vmax.xlane.f32.xlu1 %v1221_v56  ;;  %v1219_v58 = vsel %vm1218_vm1, %v1208_v53, -inf }
 0x4d3   :  { %1227 = vmax.xlane.f32.xlu0 %v1219_v58  ;;  %v1222_v20 = vsel %vm1218_vm1, %v1211_v55, -inf }
 0x4d4   :  { %v1220_v59 = vsel %vm1218_vm1, %v1209_v57, -inf }
 0x4d6   :  { %1233 = vmax.xlane.f32.xlu1 %v1222_v20 }
 0x4d7   :  { %1229 = vmax.xlane.f32.xlu0 %v1220_v59 }
 0x4dc   :  { %v1538_v60 = vpop.f32.mrb[28].mxu1 }
 0x4dd   :  { %v1193_v61 = vpop.f32.mrb[29].mxu1  ;;  %v1202_v62 = vadd.f32 %v1538_v60, %v1431_v46 }
 0x4de   :  { %v1194_v63 = vadd.f32 %v1431_v46, %v1193_v61  ;;  %v1539_v0 = vpop.f32.mrb[30].mxu1 }
 0x4df   :  { %v1196_v1 = vpop.f32.mrb[31].mxu1  ;;  %v1205_v3 = vadd.f32 %v1539_v0, %v1431_v46  ;;  %v1214_v5 = vmax.f32 %v1202_v62, 0.0 }
 0x4e0   :  { %v1212_v2 = vmax.f32 %v1194_v63, 0.0  ;;  %v1197_v4 = vadd.f32 %v1431_v46, %v1196_v1 }
 0x4e1   :  { %v1215_v8 = vmax.f32 %v1205_v3, 0.0  ;;  %v1225_v10 = vsel %vm1218_vm1, %v1214_v5, -inf }
 0x4e2   :  { %v1213_v6 = vmax.f32 %v1197_v4, 0.0  ;;  %v1223_v7 = vsel %vm1218_vm1, %v1212_v2, -inf }
 0x4e3   :  { %1235 = vmax.xlane.f32.xlu0 %v1223_v7  ;;  %v1226_v11 = vsel %vm1218_vm1, %v1215_v8, -inf }
 0x4e4   :  { %v1224_v9 = vsel %vm1218_vm1, %v1213_v6, -inf }
 0x4e5   :  { %1237 = vmax.xlane.f32.xlu1 %v1224_v9 }
 0x4e7   :  { %1239 = vmax.xlane.f32.xlu0 %v1225_v10 }
 0x4e9   :  { %1241 = vmax.xlane.f32.xlu1 %v1226_v11 }
 0x55f   :  { %v1232_v12 = vpop.xlane.xlu1 %1231 }
 0x560   :  { %v1245_v13 = vsub.f32 %v1221_v56, %v1232_v12  ;;  %v1228_v14 = vpop.xlane.xlu0 %1227 }
 0x561   :  { %v2028_v15 = vsub.f32 %v1219_v58, %v1228_v14 }
 0x562   :  { %v1255_v16 = vmul.f32 1.442695, %v1245_v13 }
 0x563   :  { %v1251_v17 = vmul.f32 1.442695, %v2028_v15  ;;  %v1234_v18 = vpop.xlane.xlu1 %1233 }
 0x564   :  { %1684 = vpow2.f32 %v1255_v16  ;;  %v1246_v19 = vsub.f32 %v1222_v20, %v1234_v18  ;;  %v1230_v23 = vpop.xlane.xlu0 %1229 }
 0x565   :  { %v2031_v27 = vsub.f32 %v1220_v59, %v1230_v23  ;;  %1686 = vpow2.f32 %v1251_v17 }
 0x566   :  { %v1257_v28 = vmul.f32 1.442695, %v1246_v19 }
 0x567   :  { %v1253_v25 = vmul.f32 1.442695, %v2031_v27 }
 0x568   :  { %1688 = vpow2.f32 %v1257_v28 }
 0x569   :  { %1690 = vpow2.f32 %v1253_v25 }
 0x56e   :  { %v1685_v26 = vpop.eup %1684 }
 0x56f   :  { %1271 = vadd.xlane.f32.xlu0 %v1685_v26  ;;  %v1687_v30 = vpop.eup %1686 }
 0x570   :  { %v1236_v29 = vpop.xlane.xlu0 %1235 }
 0x571   :  { %v2034_v31 = vsub.f32 %v1223_v7, %v1236_v29 }
 0x572   :  { %v1689_v32 = vpop.eup %1688  ;;  %v1238_v33 = vpop.xlane.xlu1 %1237 }
 0x573   :  { %v1259_v34 = vmul.f32 1.442695, %v2034_v31  ;;  %v2037_v35 = vsub.f32 %v1224_v9, %v1238_v33  ;;  %1273 = vadd.xlane.f32.xlu1 %v1689_v32  ;;  %1267 = vadd.xlane.f32.xlu0 %v1687_v30  ;;  %v1691_v39 = vpop.eup %1690 }
 0x574   :  { %v1240_v36 = vpop.xlane.xlu0 %1239 }
 0x575   :  { %1692 = vpow2.f32 %v1259_v34  ;;  %v1261_v37 = vmul.f32 1.442695, %v2037_v35  ;;  %v2040_v38 = vsub.f32 %v1225_v10, %v1240_v36 }
 0x576   :  { %v1242_v40 = vpop.xlane.xlu1 %1241 }
 0x577   :  { %1694 = vpow2.f32 %v1261_v37  ;;  %v1263_v41 = vmul.f32 1.442695, %v2040_v38  ;;  %v2043_v42 = vsub.f32 %v1226_v11, %v1242_v40  ;;  %1269 = vadd.xlane.f32.xlu1 %v1691_v39 }
 0x579   :  { %1696 = vpow2.f32 %v1263_v41  ;;  %v1265_v43 = vmul.f32 1.442695, %v2043_v42 }
 0x57b   :  { %1698 = vpow2.f32 %v1265_v43 }
 0x57f   :  { %v1693_v44 = vpop.eup %1692 }
 0x580   :  { %1275 = vadd.xlane.f32.xlu0 %v1693_v44 }
 0x581   :  { %v1695_v45 = vpop.eup %1694 }
 0x582   :  { %1277 = vadd.xlane.f32.xlu1 %v1695_v45 }
 0x583   :  { %v1697_v46 = vpop.eup %1696 }
 0x584   :  { %1279 = vadd.xlane.f32.xlu0 %v1697_v46 }
 0x585   :  { %v1699_v47 = vpop.eup %1698 }
 0x586   :  { %1281 = vadd.xlane.f32.xlu1 %v1699_v47 }
 0x5fc   :  { %v1272_v48 = vpop.xlane.xlu0 %1271 }
 0x5fd   :  { %1700 = vlog2.f32 %v1272_v48 }
 0x600   :  { %v1274_v22 = vpop.xlane.xlu1 %1273  ;;  %v1268_v49 = vpop.xlane.xlu0 %1267 }
 0x601   :  { %1702 = vlog2.f32 %v1274_v22 }
 0x602   :  { %1704 = vlog2.f32 %v1268_v49 }
 0x604   :  { %v1270_v21 = vpop.xlane.xlu1 %1269 }
 0x605   :  { %1706 = vlog2.f32 %v1270_v21 }
 0x607   :  { %v1701_v24 = vpop.eup %1700 }
 0x608   :  { %v1288_v50 = vmul.f32 0.6931472, %v1701_v24 }
 0x60a   :  { %v1301_v51 = vsub.f32 %v1245_v13, %v1288_v50 }
 0x60b   :  { %v1703_v52 = vpop.eup %1702 }
 0x60c   :  { %v1705_v53 = vpop.eup %1704  ;;  %1309 = vst [vmem:[#allocation8 + $0x10] sm:$0xff] %v1301_v51  ;;  %v1290_v54 = vmul.f32 0.6931472, %v1703_v52 }
 0x60d   :  { %v1284_v55 = vmul.f32 0.6931472, %v1705_v53  ;;  %v1276_v56 = vpop.xlane.xlu0 %1275 }
 0x60e   :  { %v1302_v57 = vsub.f32 %v1246_v19, %v1290_v54  ;;  %1708 = vlog2.f32 %v1276_v56 }
 0x60f   :  { %v1707_v58 = vpop.eup %1706  ;;  %v1299_v20 = vsub.f32 %v2028_v15, %v1284_v55  ;;  %v1278_v59 = vpop.xlane.xlu1 %1277 }
 0x610   :  { %1310 = vst [vmem:[#allocation8 + $0x18] sm:$0xff] %v1302_v57  ;;  %v1286_v60 = vmul.f32 0.6931472, %v1707_v58  ;;  %1710 = vlog2.f32 %v1278_v59 }
 0x611   :  { %1307 = vst [vmem:[#allocation8] sm:$0xff] %v1299_v20  ;;  %v1280_v61 = vpop.xlane.xlu0 %1279 }
 0x612   :  { %v1300_v62 = vsub.f32 %v2031_v27, %v1286_v60  ;;  %1712 = vlog2.f32 %v1280_v61 }
 0x613   :  { %v1282_v63 = vpop.xlane.xlu1 %1281 }
 0x614   :  { %1308 = vst [vmem:[#allocation8 + $0x8] sm:$0xff] %v1300_v62  ;;  %1714 = vlog2.f32 %v1282_v63 }
 0x618   :  { %v1709_v0 = vpop.eup %1708 }
 0x619   :  { %v1292_v1 = vmul.f32 0.6931472, %v1709_v0 }
 0x61a   :  { %v1711_v2 = vpop.eup %1710 }
 0x61b   :  { %v1303_v3 = vsub.f32 %v2034_v31, %v1292_v1  ;;  %v1294_v4 = vmul.f32 0.6931472, %v1711_v2 }
 0x61c   :  { %v1713_v5 = vpop.eup %1712 }
 0x61d   :  { %1311 = vst [vmem:[#allocation8 + $0x20] sm:$0xff] %v1303_v3  ;;  %v1304_v6 = vsub.f32 %v2037_v35, %v1294_v4  ;;  %v1296_v7 = vmul.f32 0.6931472, %v1713_v5 }
 0x61e   :  { %v1715_v8 = vpop.eup %1714 }
 0x61f   :  { %1312 = vst [vmem:[#allocation8 + $0x28] sm:$0xff] %v1304_v6  ;;  %v1305_v9 = vsub.f32 %v2040_v38, %v1296_v7  ;;  %v1298_v10 = vmul.f32 0.6931472, %v1715_v8 }
 0x621   :  { %1313 = vst [vmem:[#allocation8 + $0x30] sm:$0xff] %v1305_v9  ;;  %v1306_v11 = vsub.f32 %v2043_v42, %v1298_v10 }
 0x623   :  { %1314 = vst [vmem:[#allocation8 + $0x38] sm:$0xff] %v1306_v11 }
 0x624   :  { %1793 = shalt.err (!%p1790_p0)
}
 0x625   :  { %s1794_s3 = scalar_lea.hbm %s2078_s11, 1024 }
 0x626   :  { %p1795_p1 = scmp.ne.s32.totalorder %s2078_s11, %s1794_s3  ;;  %p1798_p2 = scmp.lt.u32.totalorder %s1794_s3, %s2078_s11 }
 0x628   :  { %p1800_p3 = pnand %p1798_p2, %p1795_p1 }
 0x62a   :  { %1803 = shalt.err (!%p1800_p3)
}
 0x62b   :  { %1326 = dma.vmem_to_hbm [thread:$0]  %s1321_s21, 1024, %s2078_s11, [#allocation4], %s1812_s29, %s1812_s29, %s1813_s30  }
 0x62c   :  { %1808 = dma.done.wait [#allocation4], 1024  }
 0x62d   :  { %1809 = vsyncadd [#allocation4], 4294966272 }
 0x62e   :  { %1330 = vsyncpa [#allocation3], 1 }
 0x62f   :  { %1331 = vsyncpa [#allocation6], 1 }
 0x630   :  { %1332 = vsyncpa [#allocation4], 1 }

</bundles_post_ra>
